<compile_context>
chip_gen: v5e
topology: v5e:2x2
jax: 0.10.0
libtpu: 0.0.40
codegen_flags: <defaults>
</compile_context>

<pallas_src>
import functools

import jax
import jax.numpy as jnp
import numpy as np
from jax.experimental import pallas as pl
from jax.experimental.pallas import tpu as pltpu

_LANE = 128


def _sublane(itemsize):
    # Sublane granule: 8 for f32, 16 for bf16/f16, 32 for 8-bit dtypes.
    return max(8, 32 // max(1, itemsize))


def _vmem_tile_budget_bytes():
    """Per-tile byte budget (before double buffering) from the device VMEM size."""
    try:
        cap = pltpu.get_tpu_info().vmem_capacity_bytes
    except Exception:
        cap = 64 * 1024 * 1024  # conservative (v7x-sized) fallback
    return max(512 * 1024, min(cap // 16, 4 * 1024 * 1024))


def _choose_tiles(n, c, itemsize, block_rows=None, block_cols=None):
    sub = _sublane(itemsize)
    budget = _vmem_tile_budget_bytes()

    # --- class (lane) tile ---
    if block_cols is not None:
        block_cols = int(block_cols)
        if block_cols >= c or block_cols % _LANE != 0 or c % block_cols != 0:
            block_cols = c
    else:
        if c * itemsize * sub <= budget:
            block_cols = c  # full rows fit comfortably -> single pass over C
        else:
            block_cols = c
            for cand in (8192, 4096, 2048, 1024, 512, 256, 128):
                if c % cand == 0:
                    block_cols = cand
                    break
            # TODO(synk): add in-kernel column masking for huge C not divisible
            # by 128 (currently falls back to full-row tiles).

    # --- batch (sublane) tile ---
    if block_rows is not None:
        block_rows = int(block_rows)
        block_rows = n if block_rows >= n else max(sub, (block_rows // sub) * sub)
    else:
        rows = max(1, budget // max(1, block_cols * itemsize))
        block_rows = n if rows >= n else max(sub, (rows // sub) * sub)

    return block_rows, block_cols


def _accumulate_tile(x_ref, t_ref, m_ref, l_ref, sx_ref, xt_ref, block_cols):
    """Online (streaming-over-C) accumulation for one (TN, TC) logits tile."""
    j = pl.program_id(1)

    @pl.when(j == 0)
    def _init():
        m_ref[...] = jnp.full_like(m_ref, -jnp.inf)
        l_ref[...] = jnp.zeros_like(l_ref)
        sx_ref[...] = jnp.zeros_like(sx_ref)
        xt_ref[...] = jnp.zeros_like(xt_ref)

    x = x_ref[...].astype(jnp.float32)                               # (TN, TC)

    # Online logsumexp (flash-style correction of the running sum).
    m_prev = m_ref[...]                                              # (TN, 1)
    m_new = jnp.maximum(m_prev, jnp.max(x, axis=-1, keepdims=True))  # (TN, 1)
    l_ref[...] = (l_ref[...] * jnp.exp(m_prev - m_new)
                  + jnp.sum(jnp.exp(x - m_new), axis=-1, keepdims=True))
    m_ref[...] = m_new

    # Running sum of logits (smoothing term).
    sx_ref[...] += jnp.sum(x, axis=-1, keepdims=True)

    # x[target] via lane-wise compare against the *global* class index.
    cls = j * block_cols + jax.lax.broadcasted_iota(jnp.int32, x.shape, 1)
    xt_ref[...] += jnp.sum(jnp.where(cls == t_ref[...], x, 0.0),
                           axis=-1, keepdims=True)


def _row_loss(m_ref, l_ref, sx_ref, xt_ref, confidence, smoothing_over_c):
    # loss = lse(x) - confidence * x[target] - (smoothing / C) * sum(x)
    lse = m_ref[...] + jnp.log(l_ref[...])
    return lse - confidence * xt_ref[...] - smoothing_over_c * sx_ref[...]


def _smooth_ce_none_kernel(x_ref, t_ref, out_ref, m_ref, l_ref, sx_ref, xt_ref,
                           *, confidence, smoothing_over_c, block_cols):
    _accumulate_tile(x_ref, t_ref, m_ref, l_ref, sx_ref, xt_ref, block_cols)

    @pl.when(pl.program_id(1) == pl.num_programs(1) - 1)
    def _finalize():
        loss = _row_loss(m_ref, l_ref, sx_ref, xt_ref,
                         confidence, smoothing_over_c)
        out_ref[...] = loss.astype(out_ref.dtype)


def _smooth_ce_reduce_kernel(x_ref, t_ref, out_ref, m_ref, l_ref, sx_ref, xt_ref,
                             acc_ref, *, confidence, smoothing_over_c, block_cols,
                             n_rows, block_rows, final_scale):
    i = pl.program_id(0)
    j = pl.program_id(1)
    last_i = pl.num_programs(0) - 1
    last_j = pl.num_programs(1) - 1

    @pl.when(jnp.logical_and(i == 0, j == 0))
    def _init_acc():
        acc_ref[...] = jnp.zeros_like(acc_ref)

    _accumulate_tile(x_ref, t_ref, m_ref, l_ref, sx_ref, xt_ref, block_cols)

    @pl.when(j == last_j)
    def _row_done():
        loss = _row_loss(m_ref, l_ref, sx_ref, xt_ref,
                         confidence, smoothing_over_c)            # (TN, 1)
        # Mask padded tail rows out of the reduction.
        row = i * block_rows + jax.lax.broadcasted_iota(jnp.int32, loss.shape, 0)
        loss = jnp.where(row < n_rows, loss, 0.0)
        acc_ref[...] += jnp.sum(loss, keepdims=True)

    @pl.when(jnp.logical_and(i == last_i, j == last_j))
    def _finalize():
        out_ref[...] = (acc_ref[...] * final_scale).astype(out_ref.dtype)


def smooth_cross_entropy_loss(x, target, smoothing=0.0, reduction="mean",
                              block_rows=None, block_cols=None):
    """Pallas TPU implementation of SmoothCrossEntropyLoss.forward.

    x:      (N, C) float logits (f32 or bf16; bf16 is NOT upcast in HBM)
    target: (N,)   integer class indices
    """
    n, c = x.shape
    confidence = 1.0 - float(smoothing)
    smoothing_over_c = float(smoothing) / float(c)
    t2d = target.astype(jnp.int32).reshape(n, 1)

    block_rows, block_cols = _choose_tiles(n, c, x.dtype.itemsize,
                                           block_rows, block_cols)
    row_tiles = pl.cdiv(n, block_rows)
    col_tiles = pl.cdiv(c, block_cols)

    in_specs = [
        pl.BlockSpec((block_rows, block_cols), lambda i, j: (i, j)),
        pl.BlockSpec((block_rows, 1), lambda i, j: (i, 0)),
    ]
    row_scratch = [pltpu.VMEM((block_rows, 1), jnp.float32)] * 4  # m, l, sum_x, x_tgt

    if reduction in ("mean", "sum"):
        out_shape = jax.ShapeDtypeStruct((1, 1), jnp.float32)
        out_spec = pl.BlockSpec((1, 1), lambda i, j: (0, 0))
        scratch_shapes = row_scratch + [pltpu.VMEM((1, 1), jnp.float32)]
        final_scale = (1.0 / float(n)) if reduction == "mean" else 1.0
        kernel = functools.partial(
            _smooth_ce_reduce_kernel,
            confidence=confidence, smoothing_over_c=smoothing_over_c,
            block_cols=block_cols, n_rows=n, block_rows=block_rows,
            final_scale=final_scale)
        semantics = ("arbitrary", "arbitrary")
        out_bytes = 4
    elif reduction == "none":
        out_shape = jax.ShapeDtypeStruct((n, 1), jnp.float32)
        out_spec = pl.BlockSpec((block_rows, 1), lambda i, j: (i, 0))
        scratch_shapes = row_scratch
        kernel = functools.partial(
            _smooth_ce_none_kernel,
            confidence=confidence, smoothing_over_c=smoothing_over_c,
            block_cols=block_cols)
        semantics = ("parallel", "arbitrary")
        out_bytes = n * 4
    else:
        raise ValueError(f"unsupported reduction: {reduction!r}")

    tile_bytes = block_rows * block_cols * x.dtype.itemsize
    vmem_limit = int(max(32 * 1024 * 1024,
                         min(3 * tile_bytes + (2 << 20), 56 * 1024 * 1024)))

    cost = pl.CostEstimate(
        flops=6 * n * c,
        transcendentals=n * c,
        bytes_accessed=n * c * x.dtype.itemsize + n * 4 + out_bytes,
    )

    out = pl.pallas_call(
        kernel,
        out_shape=out_shape,
        grid_spec=pltpu.PrefetchScalarGridSpec(
            num_scalar_prefetch=0,
            grid=(row_tiles, col_tiles),
            in_specs=in_specs,
            out_specs=out_spec,
            scratch_shapes=scratch_shapes,
        ),
        compiler_params=pltpu.CompilerParams(
            dimension_semantics=semantics,
            vmem_limit_bytes=vmem_limit,
        ),
        cost_estimate=cost,
    )(x, t2d)

    if reduction in ("mean", "sum"):
        return out[0, 0]
    return out[:, 0]


def _reference(x, target, smoothing, reduction):
    logprobs = jax.nn.log_softmax(x.astype(jnp.float32), axis=-1)
    nll = -jnp.take_along_axis(
        logprobs, target[:, None].astype(jnp.int32), axis=-1)[:, 0]
    smooth = -jnp.mean(logprobs, axis=-1)
    loss = (1.0 - smoothing) * nll + smoothing * smooth
    if reduction == "mean":
        return jnp.mean(loss)
    if reduction == "sum":
        return jnp.sum(loss)
    return loss


if __name__ == "__main__":
    key = jax.random.PRNGKey(0)
    kx, kt = jax.random.split(key)

    # N deliberately not a multiple of 8 (tail-row masking); C = 2 lane tiles.
    N, C = 20, 256
    x = jax.random.normal(kx, (N, C), dtype=jnp.float32)
    target = jax.random.randint(kt, (N,), 0, C, dtype=jnp.int32)
    smoothing = 0.1

    ok = True

    # Multi-tile path: 3 row tiles (padded tail) x 2 column tiles (online lse).
    for reduction in ("mean", "none"):
        ref = _reference(x, target, smoothing, reduction)
        out = jax.block_until_ready(
            smooth_cross_entropy_loss(x, target, smoothing, reduction,
                                      block_rows=8, block_cols=128))
        ok &= bool(np.allclose(np.asarray(out), np.asarray(ref),
                               rtol=1e-5, atol=1e-5))

    # Auto tile sizes (single tile at these shapes).
    ref = _reference(x, target, smoothing, "sum")
    out = jax.block_until_ready(
        smooth_cross_entropy_loss(x, target, smoothing, "sum"))
    ok &= bool(np.allclose(np.asarray(out), np.asarray(ref),
                           rtol=1e-5, atol=1e-5))

    # bf16 logits stay bf16 in HBM (half the read traffic); f32 math in-kernel.
    xb = x.astype(jnp.bfloat16)
    outb = jax.block_until_ready(
        smooth_cross_entropy_loss(xb, target, smoothing, "mean"))
    refb = _reference(xb.astype(jnp.float32), target, smoothing, "mean")
    ok &= bool(np.allclose(np.asarray(outb), np.asarray(refb),
                           rtol=1e-3, atol=1e-3))

    print("KERNEL_OK" if ok else "KERNEL_MISMATCH")
</pallas_src>

<mosaic_0001>
module attributes {stable_mosaic.version = 11 : i64} {
  func.func @_smooth_ce_reduce_kernel(%arg0: i32, %arg1: i32, %arg2: memref<8x128xf32, #tpu.memory_space<vmem>>, %arg3: memref<8x1xi32, #tpu.memory_space<vmem>>, %arg4: memref<1x1xf32, #tpu.memory_space<vmem>>, %arg5: memref<8x1xf32, #tpu.memory_space<vmem>>, %arg6: memref<8x1xf32, #tpu.memory_space<vmem>>, %arg7: memref<8x1xf32, #tpu.memory_space<vmem>>, %arg8: memref<8x1xf32, #tpu.memory_space<vmem>>, %arg9: memref<1x1xf32, #tpu.memory_space<vmem>>) attributes {dimension_semantics = [#tpu.dimension_semantics<arbitrary>, #tpu.dimension_semantics<arbitrary>], iteration_bounds = array<i64: 3, 2>, scalar_prefetch = 0 : i64, scratch_operands = 5 : i64, tpu.core_type = #tpu.core_type<tc>, window_params = [{transform_indices = @transform_0, window_bounds = array<i64: 8, 128>}, {transform_indices = @transform_1, window_bounds = array<i64: 8, 1>}, {pipeline_mode = #tpu.pipeline_mode<synchronous>, transform_indices = @transform_2, window_bounds = array<i64: 1, 1>}]} {
    %c0_i32 = arith.constant 0 : i32
    %0 = arith.cmpi eq, %arg0, %c0_i32 : i32
    %c0_i32_0 = arith.constant 0 : i32
    %1 = arith.cmpi eq, %arg1, %c0_i32_0 : i32
    %2 = arith.andi %0, %1 : i1
    %3 = arith.extui %2 : i1 to i32
    %c0_i32_1 = arith.constant 0 : i32
    %4 = arith.cmpi ne, %3, %c0_i32_1 : i32
    scf.if %4 {
      %cst_30 = arith.constant 0.000000e+00 : f32
      %52 = vector.broadcast %cst_30 : f32 to vector<1x1xf32>
      %c0_31 = arith.constant 0 : index
      %c0_32 = arith.constant 0 : index
      %53 = vector.load %arg9[%c0_31, %c0_32] : memref<1x1xf32, #tpu.memory_space<vmem>>, vector<1x1xf32>
      tpu.vector_store %arg9[%c0_31, %c0_32], %52 {strides = array<i32>} : memref<1x1xf32, #tpu.memory_space<vmem>>, vector<1x1xf32>,
    } else {
    }
    %c0_i32_2 = arith.constant 0 : i32
    %5 = arith.cmpi eq, %arg1, %c0_i32_2 : i32
    %6 = arith.extui %5 : i1 to i32
    %c0_i32_3 = arith.constant 0 : i32
    %7 = arith.cmpi ne, %6, %c0_i32_3 : i32
    scf.if %7 {
      %cst_30 = arith.constant 0xFF800000 : f32
      %52 = vector.broadcast %cst_30 : f32 to vector<8x1xf32>
      %c0_31 = arith.constant 0 : index
      %c0_32 = arith.constant 0 : index
      %53 = vector.load %arg5[%c0_31, %c0_32] : memref<8x1xf32, #tpu.memory_space<vmem>>, vector<8x1xf32>
      tpu.vector_store %arg5[%c0_31, %c0_32], %52 {strides = array<i32>} : memref<8x1xf32, #tpu.memory_space<vmem>>, vector<8x1xf32>,
      %cst_33 = arith.constant 0.000000e+00 : f32
      %54 = vector.broadcast %cst_33 : f32 to vector<8x1xf32>
      %c0_34 = arith.constant 0 : index
      %c0_35 = arith.constant 0 : index
      %55 = vector.load %arg6[%c0_34, %c0_35] : memref<8x1xf32, #tpu.memory_space<vmem>>, vector<8x1xf32>
      tpu.vector_store %arg6[%c0_34, %c0_35], %54 {strides = array<i32>} : memref<8x1xf32, #tpu.memory_space<vmem>>, vector<8x1xf32>,
      %cst_36 = arith.constant 0.000000e+00 : f32
      %56 = vector.broadcast %cst_36 : f32 to vector<8x1xf32>
      %c0_37 = arith.constant 0 : index
      %c0_38 = arith.constant 0 : index
      %57 = vector.load %arg7[%c0_37, %c0_38] : memref<8x1xf32, #tpu.memory_space<vmem>>, vector<8x1xf32>
      tpu.vector_store %arg7[%c0_37, %c0_38], %56 {strides = array<i32>} : memref<8x1xf32, #tpu.memory_space<vmem>>, vector<8x1xf32>,
      %cst_39 = arith.constant 0.000000e+00 : f32
      %58 = vector.broadcast %cst_39 : f32 to vector<8x1xf32>
      %c0_40 = arith.constant 0 : index
      %c0_41 = arith.constant 0 : index
      %59 = vector.load %arg8[%c0_40, %c0_41] : memref<8x1xf32, #tpu.memory_space<vmem>>, vector<8x1xf32>
      tpu.vector_store %arg8[%c0_40, %c0_41], %58 {strides = array<i32>} : memref<8x1xf32, #tpu.memory_space<vmem>>, vector<8x1xf32>,
    } else {
    }
    %c0 = arith.constant 0 : index
    %c0_4 = arith.constant 0 : index
    %8 = vector.load %arg2[%c0, %c0_4] : memref<8x128xf32, #tpu.memory_space<vmem>>, vector<8x128xf32>
    %c0_5 = arith.constant 0 : index
    %c0_6 = arith.constant 0 : index
    %9 = vector.load %arg5[%c0_5, %c0_6] : memref<8x1xf32, #tpu.memory_space<vmem>>, vector<8x1xf32>
    %cst = arith.constant dense<0xFF800000> : vector<8xf32>
    %10 = vector.multi_reduction <maximumf>, %8, %cst [1] : vector<8x128xf32> to vector<8xf32>
    %11 = vector.shape_cast %10 : vector<8xf32> to vector<8x1xf32>
    %12 = arith.maximumf %9, %11 : vector<8x1xf32>
    %c0_7 = arith.constant 0 : index
    %c0_8 = arith.constant 0 : index
    %13 = vector.load %arg6[%c0_7, %c0_8] : memref<8x1xf32, #tpu.memory_space<vmem>>, vector<8x1xf32>
    %14 = arith.subf %9, %12 : vector<8x1xf32>
    %15 = math.exp %14 : vector<8x1xf32>
    %16 = arith.mulf %13, %15 : vector<8x1xf32>
    %17 = vector.broadcast %12 : vector<8x1xf32> to vector<8x128xf32>
    %18 = arith.subf %8, %17 : vector<8x128xf32>
    %19 = math.exp %18 : vector<8x128xf32>
    %cst_9 = arith.constant dense<0.000000e+00> : vector<8xf32>
    %20 = vector.multi_reduction <add>, %19, %cst_9 [1] : vector<8x128xf32> to vector<8xf32>
    %21 = vector.shape_cast %20 : vector<8xf32> to vector<8x1xf32>
    %22 = arith.addf %16, %21 : vector<8x1xf32>
    %c0_10 = arith.constant 0 : index
    %c0_11 = arith.constant 0 : index
    %23 = vector.load %arg6[%c0_10, %c0_11] : memref<8x1xf32, #tpu.memory_space<vmem>>, vector<8x1xf32>
    tpu.vector_store %arg6[%c0_10, %c0_11], %22 {strides = array<i32>} : memref<8x1xf32, #tpu.memory_space<vmem>>, vector<8x1xf32>,
    %c0_12 = arith.constant 0 : index
    %c0_13 = arith.constant 0 : index
    %24 = vector.load %arg5[%c0_12, %c0_13] : memref<8x1xf32, #tpu.memory_space<vmem>>, vector<8x1xf32>
    tpu.vector_store %arg5[%c0_12, %c0_13], %12 {strides = array<i32>} : memref<8x1xf32, #tpu.memory_space<vmem>>, vector<8x1xf32>,
    %c0_14 = arith.constant 0 : index
    %c0_15 = arith.constant 0 : index
    %25 = vector.load %arg7[%c0_14, %c0_15] : memref<8x1xf32, #tpu.memory_space<vmem>>, vector<8x1xf32>
    %cst_16 = arith.constant dense<0.000000e+00> : vector<8xf32>
    %26 = vector.multi_reduction <add>, %8, %cst_16 [1] : vector<8x128xf32> to vector<8xf32>
    %27 = vector.shape_cast %26 : vector<8xf32> to vector<8x1xf32>
    %28 = arith.addf %25, %27 : vector<8x1xf32>
    %c0_17 = arith.constant 0 : index
    %c0_18 = arith.constant 0 : index
    %29 = vector.load %arg7[%c0_17, %c0_18] : memref<8x1xf32, #tpu.memory_space<vmem>>, vector<8x1xf32>
    tpu.vector_store %arg7[%c0_17, %c0_18], %28 {strides = array<i32>} : memref<8x1xf32, #tpu.memory_space<vmem>>, vector<8x1xf32>,
    %c128_i32 = arith.constant 128 : i32
    %30 = arith.muli %arg1, %c128_i32 : i32
    %31 = tpu.iota {dimensions = array<i32: 1>} : vector<8x128xi32>
    %32 = vector.broadcast %30 : i32 to vector<8x128xi32>
    %33 = arith.addi %32, %31 : vector<8x128xi32>
    %c0_19 = arith.constant 0 : index
    %c0_20 = arith.constant 0 : index
    %34 = vector.load %arg8[%c0_19, %c0_20] : memref<8x1xf32, #tpu.memory_space<vmem>>, vector<8x1xf32>
    %c0_21 = arith.constant 0 : index
    %c0_22 = arith.constant 0 : index
    %35 = vector.load %arg3[%c0_21, %c0_22] : memref<8x1xi32, #tpu.memory_space<vmem>>, vector<8x1xi32>
    %36 = vector.broadcast %35 : vector<8x1xi32> to vector<8x128xi32>
    %37 = arith.cmpi eq, %33, %36 : vector<8x128xi32>
    %cst_23 = arith.constant 0.000000e+00 : f32
    %38 = vector.broadcast %cst_23 : f32 to vector<8x128xf32>
    %39 = arith.select %37, %8, %38 : vector<8x128xi1>, vector<8x128xf32>
    %cst_24 = arith.constant dense<0.000000e+00> : vector<8xf32>
    %40 = vector.multi_reduction <add>, %39, %cst_24 [1] : vector<8x128xf32> to vector<8xf32>
    %41 = vector.shape_cast %40 : vector<8xf32> to vector<8x1xf32>
    %42 = arith.addf %34, %41 : vector<8x1xf32>
    %c0_25 = arith.constant 0 : index
    %c0_26 = arith.constant 0 : index
    %43 = vector.load %arg8[%c0_25, %c0_26] : memref<8x1xf32, #tpu.memory_space<vmem>>, vector<8x1xf32>
    tpu.vector_store %arg8[%c0_25, %c0_26], %42 {strides = array<i32>} : memref<8x1xf32, #tpu.memory_space<vmem>>, vector<8x1xf32>,
    %c1_i32 = arith.constant 1 : i32
    %44 = arith.cmpi eq, %arg1, %c1_i32 : i32
    %45 = arith.extui %44 : i1 to i32
    %c0_i32_27 = arith.constant 0 : i32
    %46 = arith.cmpi ne, %45, %c0_i32_27 : i32
    scf.if %46 {
      %c0_30 = arith.constant 0 : index
      %c0_31 = arith.constant 0 : index
      %52 = vector.load %arg5[%c0_30, %c0_31] : memref<8x1xf32, #tpu.memory_space<vmem>>, vector<8x1xf32>
      %c0_32 = arith.constant 0 : index
      %c0_33 = arith.constant 0 : index
      %53 = vector.load %arg6[%c0_32, %c0_33] : memref<8x1xf32, #tpu.memory_space<vmem>>, vector<8x1xf32>
      %54 = math.log %53 : vector<8x1xf32>
      %55 = arith.addf %52, %54 : vector<8x1xf32>
      %c0_34 = arith.constant 0 : index
      %c0_35 = arith.constant 0 : index
      %56 = vector.load %arg8[%c0_34, %c0_35] : memref<8x1xf32, #tpu.memory_space<vmem>>, vector<8x1xf32>
      %cst_36 = arith.constant 0.899999976 : f32
      %57 = vector.broadcast %cst_36 : f32 to vector<8x1xf32>
      %58 = arith.mulf %57, %56 : vector<8x1xf32>
      %59 = arith.subf %55, %58 : vector<8x1xf32>
      %c0_37 = arith.constant 0 : index
      %c0_38 = arith.constant 0 : index
      %60 = vector.load %arg7[%c0_37, %c0_38] : memref<8x1xf32, #tpu.memory_space<vmem>>, vector<8x1xf32>
      %cst_39 = arith.constant 3.906250e-04 : f32
      %61 = vector.broadcast %cst_39 : f32 to vector<8x1xf32>
      %62 = arith.mulf %61, %60 : vector<8x1xf32>
      %63 = arith.subf %59, %62 : vector<8x1xf32>
      %c8_i32 = arith.constant 8 : i32
      %64 = arith.muli %arg0, %c8_i32 : i32
      %65 = tpu.iota {dimensions = array<i32: 0>} : vector<8x1xi32>
      %66 = vector.broadcast %64 : i32 to vector<8x1xi32>
      %67 = arith.addi %66, %65 : vector<8x1xi32>
      %c20_i32 = arith.constant 20 : i32
      %68 = vector.broadcast %c20_i32 : i32 to vector<8x1xi32>
      %69 = arith.cmpi slt, %67, %68 : vector<8x1xi32>
      %cst_40 = arith.constant 0.000000e+00 : f32
      %70 = vector.broadcast %cst_40 : f32 to vector<8x1xf32>
      %71 = arith.select %69, %63, %70 : vector<8x1xi1>, vector<8x1xf32>
      %c0_41 = arith.constant 0 : index
      %c0_42 = arith.constant 0 : index
      %72 = vector.load %arg9[%c0_41, %c0_42] : memref<1x1xf32, #tpu.memory_space<vmem>>, vector<1x1xf32>
      %73 = vector.shape_cast %71 : vector<8x1xf32> to vector<1x8x1xf32>
      %cst_43 = arith.constant dense<0.000000e+00> : vector<1xf32>
      %74 = vector.multi_reduction <add>, %73, %cst_43 [1, 2] : vector<1x8x1xf32> to vector<1xf32>
      %75 = vector.shape_cast %74 : vector<1xf32> to vector<1x1x1xf32>
      %76 = vector.extract %75[0, 0, 0] : f32 from vector<1x1x1xf32>
      %77 = vector.broadcast %76 : f32 to vector<1x1xf32>
      %78 = arith.addf %72, %77 : vector<1x1xf32>
      %c0_44 = arith.constant 0 : index
      %c0_45 = arith.constant 0 : index
      %79 = vector.load %arg9[%c0_44, %c0_45] : memref<1x1xf32, #tpu.memory_space<vmem>>, vector<1x1xf32>
      tpu.vector_store %arg9[%c0_44, %c0_45], %78 {strides = array<i32>} : memref<1x1xf32, #tpu.memory_space<vmem>>, vector<1x1xf32>,
    } else {
    }
    %c2_i32 = arith.constant 2 : i32
    %47 = arith.cmpi eq, %arg0, %c2_i32 : i32
    %c1_i32_28 = arith.constant 1 : i32
    %48 = arith.cmpi eq, %arg1, %c1_i32_28 : i32
    %49 = arith.andi %47, %48 : i1
    %50 = arith.extui %49 : i1 to i32
    %c0_i32_29 = arith.constant 0 : i32
    %51 = arith.cmpi ne, %50, %c0_i32_29 : i32
    scf.if %51 {
      %c0_30 = arith.constant 0 : index
      %c0_31 = arith.constant 0 : index
      %52 = vector.load %arg9[%c0_30, %c0_31] : memref<1x1xf32, #tpu.memory_space<vmem>>, vector<1x1xf32>
      %cst_32 = arith.constant 5.000000e-02 : f32
      %53 = vector.broadcast %cst_32 : f32 to vector<1x1xf32>
      %54 = arith.mulf %52, %53 : vector<1x1xf32>
      %c0_33 = arith.constant 0 : index
      %c0_34 = arith.constant 0 : index
      %55 = vector.load %arg4[%c0_33, %c0_34] : memref<1x1xf32, #tpu.memory_space<vmem>>, vector<1x1xf32>
      tpu.vector_store %arg4[%c0_33, %c0_34], %54 {strides = array<i32>} : memref<1x1xf32, #tpu.memory_space<vmem>>, vector<1x1xf32>,
    } else {
    }
    return
  }
  func.func @transform_0(%arg0: i32, %arg1: i32) -> (i32, i32) {
    %c0_i32 = arith.constant 0 : i32
    return %arg0, %arg1 : i32, i32
  }
  func.func @transform_1(%arg0: i32, %arg1: i32) -> (i32, i32) {
    %c0_i32 = arith.constant 0 : i32
    %c0_i32_0 = arith.constant 0 : i32
    return %arg0, %c0_i32 : i32, i32
  }
  func.func @transform_2(%arg0: i32, %arg1: i32) -> (i32, i32) {
    %c0_i32 = arith.constant 0 : i32
    %c0_i32_0 = arith.constant 0 : i32
    %c0_i32_1 = arith.constant 0 : i32
    return %c0_i32, %c0_i32_0 : i32, i32
  }
}

</mosaic_0001>

<bundles_post_ra>
// kernel: tpu_custom_call.1
= control target key start
LH: loop header
LB: loop body
LE: loop exit
PB: predicated region body
PF: predicated region fallthrough
CT: control target
= control target key end

     0   :  { %7 = vsyncpa [#allocation8], 0  ;;  %s768_s0 = inlined_call_operand.hbm [shape: f32[20,256], index: 0, kind: input, shape index: {}]   ;;  %s769_s1 = inlined_call_operand.vmem [shape: s32[20,1], index: 1, kind: input, shape index: {}]   ;;  %s770_s2 = inlined_call_operand.hbm [shape: f32[1,1], index: 2, kind: output, shape index: {}]  }
   0x1   :  { %9 = vsyncpa [#allocation8 + $0x1], 0 }
   0x2   :  { %10 = vsyncpa [#allocation9], 0  ;;  %s633_s9 = smov 0   ;;  %s635_s10 = smov 0  }
   0x3   :  { %s637_s11 = smov 0   ;;  %s639_s12 = smov 0  }
   0x4   :  { %s641_s13 = smov 0   ;;  %s643_s14 = smov 0  }
   0x5   :  { %s645_s15 = smov 0   ;;  %s647_s16 = smov 0  }
   0x6 LB: > { %s374_s17 = sadd.s32 4294967295, %s611_s16   ;;  %s25_s18 = sadd.s32 1, %s603_s14  ;;  %s611_s16 = sphi %s647_s16, %s16_s16   ;;  %s607_s15 = sphi %s645_s15, %s779_s15   ;;  %s603_s14 = sphi %s643_s14, %s778_s14   ;;  %s599_s13 = sphi %s641_s13, %s777_s13   ;;  %s595_s12 = sphi %s639_s12, %s776_s12   ;;  %s591_s11 = sphi %s637_s11, %s775_s11   ;;  %s587_s10 = sphi %s635_s10, %s774_s10   ;;  %s583_s9 = sphi %s633_s9, %s773_s9  }
   0x7   : > { %p26_p0 = scmp.ge.s32.totalorder %s25_s18, 2  ;;  %s28_s19 = sadd.s32 1, %s607_s15 }
   0x8   : > { %s37_s20 = sadd.s32 1, %s591_s11  ;;  %p44_p1 = scmp.ne.s32.totalorder %s591_s11, %s587_s10 }
   0x9   : > { %s781_s18 = smov (%p26_p0, %s25_s18), 0  ;;  %s783_s19 = smov (!%p26_p0, %s28_s19), %s607_s15 }
   0xa   : > { %s33_s21 = ssub.s32 %s603_s14, %s781_s18  ;;  %p45_p2 = scmp.eq.s32.totalorder %s611_s16, 0 }
   0xb   : > { %p30_p3 = scmp.ge.s32.totalorder %s783_s19, 3  ;;  %p50_p4 = scmp.ne.s32.totalorder %s587_s10, %s583_s9 }
   0xc   : > { %p684_p5 = por %p45_p2, %p44_p1  ;;  %p51_p6 = scmp.eq.s32.totalorder %s374_s17, 0 }
   0xd   : > { %s785_s19 = smov (%p30_p3, %s783_s19), 0  ;;  %p403_p8 = scmp.lt.s32.totalorder %s611_s16, 6 }
   0xe   : > { %p692_p7 = por %p51_p6, %p50_p4  ;;  %s32_s24 = ssub.s32 %s607_s15, %s785_s19 }
   0xf   : > { %s34_s25 = sor.u32 %s33_s21, %s32_s24  ;;  %s121_s26 = sand.u32 1, %s591_s11  }
  0x10   : > { %p35_p9 = scmp.eq.s32.totalorder %s34_s25, 0  ;;  %s377_s27 = sshll.u32 %s121_s26, 3 }
  0x11   : > { %s378_s28 = sshll.u32 %s607_s15, 1  ;;  %s125_s4 = scalar_lea.vmem [#allocation7], %s377_s27 }
  0x12   : > { %s702_s29 = scalar_select %p35_p9, %s591_s11, %s37_s20  }
  0x13   : > { %s129_s30 = sadd.s32 %s603_s14, %s378_s28  ;;  %s135_s5 = sshll.u32 %s125_s4, 4  ;;  %s136_s5 = int_to_ptr.vmem [resolvable:$true] %s135_s5 }
  0x14   : > { %s379_s3 = sshll.u32 %s129_s30, 3  ;;  %p400_p10 = pnand %p403_p8, %p684_p5 }
  0x15   : > { %s131_s8 = scalar_lea.hbm %s768_s0, %s379_s3  ;;  %p380_p11 = scmp.ge.s32.totalorder %s611_s16, 1 }
  0x16   : > { %s133_s9 = sshll.u32 %s131_s8, 4  ;;  %p147_p12 = scmp.lt.s32.totalorder %s611_s16, 7  ;;  %s134_s9 = int_to_ptr.hbm [resolvable:$true] %s133_s9 }
  0x17   : > { %s122_s21 = scalar_lea.sflag [#allocation8], %s121_s26 }
  0x18   : > { %402 = dma.hbm_to_vmem [thread:$0]  (!%p400_p10), %s134_s9, 128, %s136_s5, %s122_s21  }
  0x19   : > { %p148_p13 = pnand %p380_p11, %p147_p12 }
  0x1a   : > { %s153_s20 = sand.u32 (!%p148_p13), 1, %s587_s10  }
  0x1b   : > { %151 = sbr.rel (%p148_p13) target bundleno = 646 (0x286), region = 28  ;;  %s381_s24 = sshll.u32 (!%p148_p13), %s153_s20, 3 }
  0x1c   : > { %s154_s25 = scalar_lea.sflag (!%p148_p13), [#allocation8], %s153_s20  ;;  %s157_s27 = scalar_lea.vmem (!%p148_p13), [#allocation7], %s381_s24 }
  0x20   : > { %574 = dma.done.wait (%p692_p7), %s154_s25, 128  }
  0x21   : > { %576 = vsyncadd (%p692_p7), %s154_s25, 4294967168  ;;  %p178_p0 = scmp.lt.s32.totalorder %s599_s13, 2  ;;  %p182_p1 = scmp.eq.s32.totalorder %s599_s13, 0 }
  0x22   : > { %p183_p2 = scmp.eq.s32.totalorder %s595_s12, 0 }
  0x23   : > { %s179_s22 = scalar_select %p178_p0, %s599_s13, 2 }
  0x24   : > { %p184_p3 = pnand %p183_p2, %p182_p1 }
  0x25   : > { %s382_s26 = sshll.u32 %s179_s22, 3 }
  0x26   : > { %s181_s3 = scalar_lea.vmem %s769_s1, %s382_s26  ;;  %187 = sbr.rel (%p184_p3) target bundleno = 45 (0x2d), region = 36 }
  0x2b   : > { %vm188_vm0 = vcmask 0   ;;  %v613_v0 = vmov 0.0  }
  0x2c   : > { %189 = vst.msk [vmem:[#allocation6] sm:$0x1] %vm188_vm0, %v613_v0 }
  0x2d PF: > { %p383_p4 = scmp.ne.s32.totalorder %s595_s12, 0 }
  0x2f   : > { %192 = sbr.rel (%p383_p4) target bundleno = 57 (0x39), region = 40 }
  0x34   : > { %vm193_vm1 = vcmask 7168   ;;  %v614_v1 = vmov -inf   ;;  %v615_v2 = vmov 0.0  }
  0x35   : > { %194 = vst.msk [vmem:[#allocation2] sm:$0xff] %vm193_vm1, %v614_v1 }
  0x36   : > { %195 = vst.msk [vmem:[#allocation3] sm:$0xff] %vm193_vm1, %v615_v2 }
  0x37   : > { %196 = vst.msk [vmem:[#allocation4] sm:$0xff] %vm193_vm1, %v615_v2 }
  0x38   : > { %197 = vst.msk [vmem:[#allocation5] sm:$0xff] %vm193_vm1, %v615_v2 }
  0x39 PF: > { %v198_v3 = vld [vmem:[%s157_s27] sm:$0xff]  ;;  %v616_v4 = vmov 0   ;;  %vm219_vm2 = vcmask 7168   ;;  %s384_s23 = sshll.u32 %s595_s12, 7  ;;  %v228_v10 = vlaneseq  ;;  %p243_p5 = scmp.eq.s32.totalorder %s595_s12, 1 }
  0x3a   : > { %200 = vmax.xlane.f32.xlu0 %v198_v3  ;;  %223 = vadd.xlane.f32.xlu2 %v198_v3  ;;  %v233_v5 = vld [vmem:[%s181_s3] sm:$0xff]  ;;  %v230_v11 = vstv %s384_s23  ;;  %p385_p6 = scmp.ne.s32.totalorder %s595_s12, 1 }
  0x3b   : > { %475 = vset.pattern.permute.xlu0 %v616_v4  ;;  %476 = vset.pattern.permute.xlu1 %v616_v4  ;;  %v229_v12 = vand.u32 127, %v228_v10  ;;  %s386_s4 = sshll.u32 (!%p385_p6), %s599_s13, 3 }
  0x3c   : > { %235 = vperm.xlu1 %476, %v233_v5   ;;  %v199_v6 = vld [vmem:[#allocation2] sm:$0xff] }
  0x3d   : > { %v231_v14 = vadd.s32 %v230_v11, %v229_v12  ;;  %v203_v28 = vld [vmem:[#allocation3] sm:$0xff] }
  0x3e   : > { %v222_v16 = vld [vmem:[#allocation4] sm:$0xff] }
  0x3f   : > { %v232_v23 = vld [vmem:[#allocation5] sm:$0xff] }
  0xad   : > { %v201_v7 = vpop.xlane.xlu0 %200  ;;  %v224_v17 = vpop.xlane.xlu2 %223 }
  0xae   : > { %v202_v8 = vmax.f32 %v199_v6, %v201_v7  ;;  %v236_v13 = vpop.permute.xlu1 %235  ;;  %v225_v18 = vadd.f32 %v224_v17, %v222_v16 }
  0xaf   : > { %vm237_vm3 = vcmp.eq.s32.totalorder %v231_v14, %v236_v13 }
  0xb0   : > { %v204_v9 = vsub.f32 %v199_v6, %v202_v8  ;;  %221 = vst.msk [vmem:[#allocation2] sm:$0xff] %vm219_vm2, %v202_v8  ;;  %210 = vperm.xlu0 %475, %v202_v8   ;;  %v238_v15 = vsel %vm237_vm3, %v198_v3, 0.0 }
  0xb1   : > { %239 = vadd.xlane.f32.xlu2 %v238_v15  ;;  %226 = vst.msk [vmem:[#allocation4] sm:$0xff] %vm219_vm2, %v225_v18 }
  0xb2   : > { %v205_v26 = vmul.f32 1.442695, %v204_v9 }
 0x122   : > { %v211_v19 = vpop.permute.xlu0 %210 }
 0x123   : > { %v213_v20 = vsub.f32 %v198_v3, %v211_v19 }
 0x124   : > { %v240_v24 = vpop.xlane.xlu2 %239 }
 0x125   : > { %v214_v21 = vmul.f32 1.442695, %v213_v20  ;;  %v241_v25 = vadd.f32 %v240_v24, %v232_v23 }
 0x127   : > { %477 = vpow2.f32 %v214_v21  ;;  %242 = vst.msk [vmem:[#allocation5] sm:$0xff] %vm219_vm2, %v241_v25 }
 0x128   : > { %479 = vpow2.f32 %v205_v26 }
 0x12d   : > { %v478_v22 = vpop.eup %477 }
 0x12e   : > { %216 = vadd.xlane.f32.xlu1 %v478_v22  ;;  %v480_v27 = vpop.eup %479 }
 0x12f   : > { %v207_v29 = vmul.f32 %v480_v27, %v203_v28 }
 0x1a0   : > { %246 = sbr.rel (%p385_p6) target bundleno = 627 (0x273), region = 44 }
 0x1a1   : > { %v217_v30 = vpop.xlane.xlu1 %216 }
 0x1a2   : > { %v218_v31 = vadd.f32 %v217_v30, %v207_v29 }
 0x1a4   : > { %220 = vst.msk [vmem:[#allocation3] sm:$0xff] %vm219_vm2, %v218_v31 }
 0x1a5   : > { %v252_v33 = vld [vmem:[#allocation5] sm:$0xff]  ;;  %v260_v34 = vshrl.u32 %v228_v10, 7  ;;  %v261_v35 = vstv %s386_s4  ;;  %v247_v37 = vld [vmem:[#allocation2] sm:$0xff]  ;;  %v255_v38 = vld [vmem:[#allocation4] sm:$0xff]  ;;  %vm278_vm5 = vcmask 0  }
 0x1a6   : > { %v253_v40 = vmul.f32 0.9, %v252_v33  ;;  %v256_v43 = vmul.f32 0.000390625, %v255_v38  ;;  %v265_v55 = vld [vmem:[#allocation6] sm:$0x1] }
 0x1a7   : > { %v262_v41 = vadd.s32 %v261_v35, %v260_v34 }
 0x1a9   : > { %vm263_vm4 = vcmp.lt.s32.totalorder %v262_v41, 20 }
 0x1ab   : > { %v248_v32 = vld [vmem:[#allocation3] sm:$0xff] }
 0x1ac   : > { %481 = vlog2.f32 %v248_v32 }
 0x1b2   : > { %v482_v36 = vpop.eup %481 }
 0x1b3   : > { %v250_v39 = vmul.f32 0.6931472, %v482_v36 }
 0x1b5   : > { %v251_v42 = vadd.f32 %v250_v39, %v247_v37 }
 0x1b7   : > { %v254_v44 = vsub.f32 %v251_v42, %v253_v40 }
 0x1b9   : > { %v257_v45 = vsub.f32 %v254_v44, %v256_v43 }
 0x1bb   : > { %v264_v46 = vsel %vm263_vm4, %v257_v45, 0.0 }
 0x1bc   : > { %v266_v47 = vsel %vm219_vm2, %v264_v46, 0.0 }
 0x1bd   : > { %267 = vadd.xlane.f32.xlu0 %v266_v47 }
 0x230   : > { %v268_v48 = vpop.xlane.xlu0 %267 }
 0x231   : > { %v269_v49 = vrot.slane %v268_v48, 4 }
 0x233   : > { %v270_v50 = vadd.f32 %v269_v49, %v268_v48 }
 0x235   : > { %v271_v51 = vrot.slane %v270_v50, 2 }
 0x237   : > { %v272_v52 = vadd.f32 %v271_v51, %v270_v50 }
 0x239   : > { %v273_v53 = vrot.slane %v272_v52, 1 }
 0x23b   : > { %v274_v54 = vadd.f32 %v273_v53, %v272_v52 }
 0x23d   : > { %391 = vpush %v274_v54 }
 0x26e   : > { %s392_s5 = spop %391 }
 0x26f   : > { %v276_v56 = vstv %s392_s5 }
 0x270   : > { %v277_v57 = vadd.f32 %v276_v56, %v265_v55 }
 0x272   : > { %279 = vst.msk [vmem:[#allocation6] sm:$0x1] %vm278_vm5, %v277_v57 }
 0x273 PF: > { %p280_p7 = scmp.eq.s32.totalorder %s599_s13, 2 }
 0x275   : > { %p281_p8 = pnand %p280_p7, %p243_p5 }
 0x277   : > { %284 = sbr.rel (%p281_p8) target bundleno = 640 (0x280), region = 48 }
 0x27c   : > { %v285_v58 = vld [vmem:[#allocation6] sm:$0x1]  ;;  %vm287_vm6 = vcmask 0  }
 0x27d   : > { %v286_v59 = vmul.f32 0.05, %v285_v58 }
 0x27f   : > { %288 = vst.msk [vmem:[#allocation10] sm:$0x1] %vm287_vm6, %v286_v59 }
 0x280 PF: > { %p404_p9 = scmp.eq.s32.totalorder %s374_s17, 5  ;;  %s297_s8 = sshll.u32 %s770_s2, 4  ;;  %s298_s8 = int_to_ptr.hbm [resolvable:$true] %s297_s8 }
 0x281   : > { %s617_s9 = smov [#allocation10]  }
 0x282   : > { %s295_s21 = sshll.u32 %s617_s9, 4  ;;  %s296_s21 = int_to_ptr.vmem [resolvable:$true] %s295_s21 }
 0x283   : > { %396 = dma.vmem_to_hbm [thread:$0]  (%p404_p9), %s296_s21, 16, %s298_s8, [#allocation9]  }
 0x284   : > { %578 = dma.done.wait (%p404_p9), [#allocation9], 16  }
 0x285   : > { %580 = vsyncadd (%p404_p9), [#allocation9], 4294967280 }
 0x286 PF: > { %s16_s16 = sadd.s32 1, %s611_s16   ;;  %s773_s9 = smov %s587_s10 }
 0x287   : > { %p13_p10 = scmp.ge.s32.totalorder %s16_s16, 8   ;;  %s774_s10 = smov %s591_s11 }
 0x288   : > { %s775_s11 = smov %s702_s29  ;;  %s776_s12 = smov %s603_s14 }
 0x289   : > { %s777_s13 = smov %s607_s15  ;;  %s778_s14 = smov %s781_s18 }
 0x28a   : > { %s779_s15 = smov %s785_s19  ;;  %15 = sbr.rel (!%p13_p10) target bundleno = 6 (0x6), region = 84 }
 0x28f   :  { %311 = vsyncpa [#allocation8], 1 }
 0x290   :  { %313 = vsyncpa [#allocation8 + $0x1], 1 }
 0x291   :  { %314 = vsyncpa [#allocation9], 1 }
 0x292   :  { %316 = vsyncpa [#allocation9 + $0x1], 1 }

</bundles_post_ra>
